<compile_context>
chip_gen: v7x
topology: tpu7x:2x2x1
jax: 0.10.0
libtpu: 0.0.40
codegen_flags: <defaults>
</compile_context>

<pallas_src>
import functools

import jax
import jax.numpy as jnp
from jax.experimental import pallas as pl
from jax.experimental.pallas import tpu as pltpu


def _resblock_kernel(x_ref, w1_ref, s1_ref, b1_ref, w2_ref, s2_ref, b2_ref,
                     out_ref, *, H, W, Cin, Cout, compute_dtype):
    HW = H * W
    x = x_ref[0]                                    # (Cin, H*W) f32, lane-dense

    # Flat column index of every spatial position (for the W-boundary masks).
    col = jax.lax.broadcasted_iota(jnp.int32, (1, HW), 1) % W

    def im2col(img, c):
        """img: (c, H*W) -> (9*c, H*W) in compute_dtype; rows ordered (kh, kw, cin)."""
        img = img.astype(compute_dtype)
        taps = []
        for dh in (-1, 0, 1):
            for dw in (-1, 0, 1):
                o = dh * W + dw                     # flat shift for this tap
                if o > 0:
                    shifted = jnp.concatenate(
                        [img[:, o:], jnp.zeros((c, o), compute_dtype)], axis=1)
                elif o < 0:
                    shifted = jnp.concatenate(
                        [jnp.zeros((c, -o), compute_dtype), img[:, :o]], axis=1)
                else:
                    shifted = img
                if dw != 0:
                    # Zero the positions whose source column fell off the row
                    # (flat shift would otherwise wrap into the adjacent row).
                    valid = jnp.logical_and(col + dw >= 0, col + dw < W)
                    shifted = jnp.where(valid, shifted,
                                        jnp.zeros((), compute_dtype))
                taps.append(shifted)
        return jnp.concatenate(taps, axis=0)        # (9*c, H*W)

    # ---- conv1 as one MXU matmul (bf16 in, f32 accumulate) + BN1 + ReLU ----
    p1 = im2col(x, Cin)                                                 # (9Cin, HW)
    y1 = jnp.dot(w1_ref[...], p1, preferred_element_type=jnp.float32)   # (Cout, HW)
    h = jnp.maximum(y1 * s1_ref[...] + b1_ref[...], 0.0)                # f32

    # ---- conv2 as one MXU matmul + BN2 + identity residual + ReLU ----
    p2 = im2col(h, Cout)                                                # (9Cout, HW)
    y2 = jnp.dot(w2_ref[...], p2, preferred_element_type=jnp.float32)   # (Cout, HW)
    y = y2 * s2_ref[...] + b2_ref[...]
    out_ref[0] = jnp.maximum(y + x, 0.0)


def fold_batchnorm(gamma, beta, mean, var, eps=1e-5):
    scale = gamma / jnp.sqrt(var + eps)
    return scale, beta - mean * scale


def residual_block(x_nchw, w1_oihw, s1, b1, w2_oihw, s2, b2,
                   *, compute_dtype=jnp.bfloat16):
    """x_nchw: (N, C, H, W) f32; w*: (Cout, Cin, 3, 3) OIHW; s*/b*: (Cout,) folded BN."""
    N, Cin, H, W = x_nchw.shape
    Cout = w1_oihw.shape[0]
    assert Cin == Cout, "identity shortcut (shortcut=None) requires in_ch == out_ch"
    HW = H * W

    # NCHW -> (N, C, H*W): spatial on the lane axis (free metadata reshape in XLA).
    x_flat = x_nchw.reshape(N, Cin, HW).astype(jnp.float32)

    # OIHW -> (Cout, kh, kw, Cin) -> (Cout, 9*Cin); row order matches im2col above.
    w1_flat = jnp.transpose(w1_oihw, (0, 2, 3, 1)).reshape(Cout, 9 * Cin)
    w2_flat = jnp.transpose(w2_oihw, (0, 2, 3, 1)).reshape(Cout, 9 * Cout)
    w1_flat = w1_flat.astype(compute_dtype)
    w2_flat = w2_flat.astype(compute_dtype)

    s1c = s1.reshape(Cout, 1).astype(jnp.float32)
    b1c = b1.reshape(Cout, 1).astype(jnp.float32)
    s2c = s2.reshape(Cout, 1).astype(jnp.float32)
    b2c = b2.reshape(Cout, 1).astype(jnp.float32)

    kernel = functools.partial(_resblock_kernel, H=H, W=W, Cin=Cin, Cout=Cout,
                               compute_dtype=compute_dtype)
    const = lambda n: (0, 0)

    out_flat = pl.pallas_call(
        kernel,
        out_shape=jax.ShapeDtypeStruct((N, Cout, HW), jnp.float32),
        grid_spec=pltpu.PrefetchScalarGridSpec(
            num_scalar_prefetch=0,
            grid=(N,),
            in_specs=[
                pl.BlockSpec((1, Cin, HW), lambda n: (n, 0, 0)),
                pl.BlockSpec((Cout, 9 * Cin), const),
                pl.BlockSpec((Cout, 1), const),
                pl.BlockSpec((Cout, 1), const),
                pl.BlockSpec((Cout, 9 * Cout), const),
                pl.BlockSpec((Cout, 1), const),
                pl.BlockSpec((Cout, 1), const),
            ],
            out_specs=pl.BlockSpec((1, Cout, HW), lambda n: (n, 0, 0)),
        ),
        compiler_params=pltpu.CompilerParams(
            dimension_semantics=("parallel",),
            vmem_limit_bytes=64 * 1024 * 1024,
        ),
    )(x_flat, w1_flat, s1c, b1c, w2_flat, s2c, b2c)

    return out_flat.reshape(N, Cout, H, W)


def _ref_forward(x_nchw, w1_oihw, s1, b1, w2_oihw, s2, b2,
                 *, compute_dtype=jnp.bfloat16):
    """Pure-JAX reference mirroring the kernel's bf16-input / f32-accumulate matmuls."""
    dn = ("NCHW", "OIHW", "NCHW")
    h = jax.lax.conv_general_dilated(
        x_nchw.astype(compute_dtype), w1_oihw.astype(compute_dtype),
        (1, 1), ((1, 1), (1, 1)), dimension_numbers=dn,
        preferred_element_type=jnp.float32)
    h = jnp.maximum(h * s1.reshape(1, -1, 1, 1) + b1.reshape(1, -1, 1, 1), 0.0)
    y = jax.lax.conv_general_dilated(
        h.astype(compute_dtype), w2_oihw.astype(compute_dtype),
        (1, 1), ((1, 1), (1, 1)), dimension_numbers=dn,
        preferred_element_type=jnp.float32)
    y = y * s2.reshape(1, -1, 1, 1) + b2.reshape(1, -1, 1, 1)
    return jnp.maximum(y + x_nchw, 0.0)


if __name__ == "__main__":
    N, C, H, W = 2, 4, 16, 16
    key = jax.random.PRNGKey(0)
    ks = jax.random.split(key, 12)

    # PyTorch-style NCHW input and OIHW conv weights (deterministic).
    x = jax.random.normal(ks[0], (N, C, H, W), jnp.float32)
    w1 = 0.2 * jax.random.normal(ks[1], (C, C, 3, 3), jnp.float32)
    w2 = 0.2 * jax.random.normal(ks[2], (C, C, 3, 3), jnp.float32)

    # BatchNorm params (eval mode), folded into per-channel scale/bias.
    eps = 1e-5
    gamma1 = 1.0 + 0.1 * jax.random.normal(ks[3], (C,), jnp.float32)
    beta1 = 0.1 * jax.random.normal(ks[4], (C,), jnp.float32)
    mean1 = 0.1 * jax.random.normal(ks[5], (C,), jnp.float32)
    var1 = jnp.abs(jax.random.normal(ks[6], (C,), jnp.float32)) + 0.5
    gamma2 = 1.0 + 0.1 * jax.random.normal(ks[7], (C,), jnp.float32)
    beta2 = 0.1 * jax.random.normal(ks[8], (C,), jnp.float32)
    mean2 = 0.1 * jax.random.normal(ks[9], (C,), jnp.float32)
    var2 = jnp.abs(jax.random.normal(ks[10], (C,), jnp.float32)) + 0.5

    s1, b1 = fold_batchnorm(gamma1, beta1, mean1, var1, eps)
    s2, b2 = fold_batchnorm(gamma2, beta2, mean2, var2, eps)

    out = residual_block(x, w1, s1, b1, w2, s2, b2)
    out = jax.block_until_ready(out)
    assert out.shape == (N, C, H, W)

    ref = _ref_forward(x, w1, s1, b1, w2, s2, b2)
    err = float(jnp.max(jnp.abs(out - ref)))
    assert jnp.allclose(out, ref, atol=2e-3, rtol=2e-3), f"max abs err {err}"

    print("KERNEL_OK")
</pallas_src>

<mosaic_0001>
module attributes {stable_mosaic.version = 11 : i64} {
  func.func @_resblock_kernel(%arg0: i32, %arg1: memref<1x4x256xf32, #tpu.memory_space<vmem>>, %arg2: memref<4x36xbf16, #tpu.memory_space<vmem>>, %arg3: memref<4x1xf32, #tpu.memory_space<vmem>>, %arg4: memref<4x1xf32, #tpu.memory_space<vmem>>, %arg5: memref<4x36xbf16, #tpu.memory_space<vmem>>, %arg6: memref<4x1xf32, #tpu.memory_space<vmem>>, %arg7: memref<4x1xf32, #tpu.memory_space<vmem>>, %arg8: memref<1x4x256xf32, #tpu.memory_space<vmem>>) attributes {dimension_semantics = [#tpu.dimension_semantics<parallel>], iteration_bounds = array<i64: 2>, scalar_prefetch = 0 : i64, scratch_operands = 0 : i64, tpu.core_type = #tpu.core_type<tc>, window_params = [{transform_indices = @transform_0, window_bounds = array<i64: 1, 4, 256>}, {pipeline_mode = #tpu.pipeline_mode<synchronous>, transform_indices = @transform_1, window_bounds = array<i64: 4, 36>}, {pipeline_mode = #tpu.pipeline_mode<synchronous>, transform_indices = @transform_2, window_bounds = array<i64: 4, 1>}, {pipeline_mode = #tpu.pipeline_mode<synchronous>, transform_indices = @transform_3, window_bounds = array<i64: 4, 1>}, {pipeline_mode = #tpu.pipeline_mode<synchronous>, transform_indices = @transform_4, window_bounds = array<i64: 4, 36>}, {pipeline_mode = #tpu.pipeline_mode<synchronous>, transform_indices = @transform_5, window_bounds = array<i64: 4, 1>}, {pipeline_mode = #tpu.pipeline_mode<synchronous>, transform_indices = @transform_6, window_bounds = array<i64: 4, 1>}, {transform_indices = @transform_7, window_bounds = array<i64: 1, 4, 256>}]} {
    %c0 = arith.constant 0 : index
    %c0_0 = arith.constant 0 : index
    %c0_1 = arith.constant 0 : index
    %0 = vector.load %arg1[%c0, %c0_0, %c0_1] : memref<1x4x256xf32, #tpu.memory_space<vmem>>, vector<1x4x256xf32>
    %1 = vector.shape_cast %0 : vector<1x4x256xf32> to vector<4x256xf32>
    %2 = tpu.iota {dimensions = array<i32: 1>} : vector<1x256xi32>
    %c16_i32 = arith.constant 16 : i32
    %c0_i32 = arith.constant 0 : i32
    %3 = arith.cmpi eq, %c16_i32, %c0_i32 : i32
    %c1_i32 = arith.constant 1 : i32
    %4 = arith.select %3, %c1_i32, %c16_i32 : i32
    %5 = vector.broadcast %4 : i32 to vector<1x256xi32>
    %6 = arith.remsi %2, %5 : vector<1x256xi32>
    %c0_i32_2 = arith.constant 0 : i32
    %7 = vector.broadcast %c0_i32_2 : i32 to vector<1x256xi32>
    %8 = arith.cmpi ne, %6, %7 : vector<1x256xi32>
    %c0_i32_3 = arith.constant 0 : i32
    %9 = vector.broadcast %c0_i32_3 : i32 to vector<1x256xi32>
    %10 = arith.cmpi slt, %6, %9 : vector<1x256xi32>
    %c0_i32_4 = arith.constant 0 : i32
    %11 = arith.cmpi slt, %4, %c0_i32_4 : i32
    %12 = vector.broadcast %11 : i1 to vector<1x256xi1>
    %13 = vector.broadcast %12 : vector<1x256xi1> to vector<1x256xi1>
    %14 = arith.xori %10, %13 : vector<1x256xi1>
    %15 = arith.andi %14, %8 : vector<1x256xi1>
    %16 = vector.broadcast %4 : i32 to vector<1x256xi32>
    %17 = arith.addi %6, %16 : vector<1x256xi32>
    %18 = arith.select %15, %17, %6 : vector<1x256xi1>, vector<1x256xi32>
    %19 = arith.truncf %1 : vector<4x256xf32> to vector<4x256xbf16>
    %cst = arith.constant 0.000000e+00 : bf16
    %20 = vector.broadcast %cst : bf16 to vector<4x17xbf16>
    %21 = vector.extract_strided_slice %19 {offsets = [0, 0], sizes = [4, 239], strides = [1, 1]} : vector<4x256xbf16> to vector<4x239xbf16>
    %22 = tpu.concatenate %20, %21 in 1 : vector<4x17xbf16>, vector<4x239xbf16> -> vector<4x256xbf16>
    %c-1_i32 = arith.constant -1 : i32
    %23 = vector.broadcast %c-1_i32 : i32 to vector<1x256xi32>
    %24 = arith.addi %18, %23 : vector<1x256xi32>
    %c0_i32_5 = arith.constant 0 : i32
    %25 = vector.broadcast %c0_i32_5 : i32 to vector<1x256xi32>
    %26 = arith.cmpi sge, %24, %25 : vector<1x256xi32>
    %c-1_i32_6 = arith.constant -1 : i32
    %27 = vector.broadcast %c-1_i32_6 : i32 to vector<1x256xi32>
    %28 = arith.addi %18, %27 : vector<1x256xi32>
    %c16_i32_7 = arith.constant 16 : i32
    %29 = vector.broadcast %c16_i32_7 : i32 to vector<1x256xi32>
    %30 = arith.cmpi slt, %28, %29 : vector<1x256xi32>
    %31 = arith.andi %26, %30 : vector<1x256xi1>
    %cst_8 = arith.constant 0.000000e+00 : bf16
    %32 = vector.shape_cast %31 : vector<1x256xi1> to vector<1x256xi1>
    %33 = vector.broadcast %32 : vector<1x256xi1> to vector<4x256xi1>
    %34 = vector.broadcast %cst_8 : bf16 to vector<4x256xbf16>
    %35 = arith.select %33, %22, %34 : vector<4x256xi1>, vector<4x256xbf16>
    %cst_9 = arith.constant 0.000000e+00 : bf16
    %36 = vector.broadcast %cst_9 : bf16 to vector<4x16xbf16>
    %37 = vector.extract_strided_slice %19 {offsets = [0, 0], sizes = [4, 240], strides = [1, 1]} : vector<4x256xbf16> to vector<4x240xbf16>
    %38 = tpu.concatenate %36, %37 in 1 : vector<4x16xbf16>, vector<4x240xbf16> -> vector<4x256xbf16>
    %cst_10 = arith.constant 0.000000e+00 : bf16
    %39 = vector.broadcast %cst_10 : bf16 to vector<4x15xbf16>
    %40 = vector.extract_strided_slice %19 {offsets = [0, 0], sizes = [4, 241], strides = [1, 1]} : vector<4x256xbf16> to vector<4x241xbf16>
    %41 = tpu.concatenate %39, %40 in 1 : vector<4x15xbf16>, vector<4x241xbf16> -> vector<4x256xbf16>
    %c1_i32_11 = arith.constant 1 : i32
    %42 = vector.broadcast %c1_i32_11 : i32 to vector<1x256xi32>
    %43 = arith.addi %18, %42 : vector<1x256xi32>
    %c0_i32_12 = arith.constant 0 : i32
    %44 = vector.broadcast %c0_i32_12 : i32 to vector<1x256xi32>
    %45 = arith.cmpi sge, %43, %44 : vector<1x256xi32>
    %c1_i32_13 = arith.constant 1 : i32
    %46 = vector.broadcast %c1_i32_13 : i32 to vector<1x256xi32>
    %47 = arith.addi %18, %46 : vector<1x256xi32>
    %c16_i32_14 = arith.constant 16 : i32
    %48 = vector.broadcast %c16_i32_14 : i32 to vector<1x256xi32>
    %49 = arith.cmpi slt, %47, %48 : vector<1x256xi32>
    %50 = arith.andi %45, %49 : vector<1x256xi1>
    %cst_15 = arith.constant 0.000000e+00 : bf16
    %51 = vector.shape_cast %50 : vector<1x256xi1> to vector<1x256xi1>
    %52 = vector.broadcast %51 : vector<1x256xi1> to vector<4x256xi1>
    %53 = vector.broadcast %cst_15 : bf16 to vector<4x256xbf16>
    %54 = arith.select %52, %41, %53 : vector<4x256xi1>, vector<4x256xbf16>
    %cst_16 = arith.constant 0.000000e+00 : bf16
    %55 = vector.broadcast %cst_16 : bf16 to vector<4x1xbf16>
    %56 = vector.extract_strided_slice %19 {offsets = [0, 0], sizes = [4, 255], strides = [1, 1]} : vector<4x256xbf16> to vector<4x255xbf16>
    %57 = tpu.concatenate %55, %56 in 1 : vector<4x1xbf16>, vector<4x255xbf16> -> vector<4x256xbf16>
    %c-1_i32_17 = arith.constant -1 : i32
    %58 = vector.broadcast %c-1_i32_17 : i32 to vector<1x256xi32>
    %59 = arith.addi %18, %58 : vector<1x256xi32>
    %c0_i32_18 = arith.constant 0 : i32
    %60 = vector.broadcast %c0_i32_18 : i32 to vector<1x256xi32>
    %61 = arith.cmpi sge, %59, %60 : vector<1x256xi32>
    %c-1_i32_19 = arith.constant -1 : i32
    %62 = vector.broadcast %c-1_i32_19 : i32 to vector<1x256xi32>
    %63 = arith.addi %18, %62 : vector<1x256xi32>
    %c16_i32_20 = arith.constant 16 : i32
    %64 = vector.broadcast %c16_i32_20 : i32 to vector<1x256xi32>
    %65 = arith.cmpi slt, %63, %64 : vector<1x256xi32>
    %66 = arith.andi %61, %65 : vector<1x256xi1>
    %cst_21 = arith.constant 0.000000e+00 : bf16
    %67 = vector.shape_cast %66 : vector<1x256xi1> to vector<1x256xi1>
    %68 = vector.broadcast %67 : vector<1x256xi1> to vector<4x256xi1>
    %69 = vector.broadcast %cst_21 : bf16 to vector<4x256xbf16>
    %70 = arith.select %68, %57, %69 : vector<4x256xi1>, vector<4x256xbf16>
    %71 = vector.extract_strided_slice %19 {offsets = [0, 1], sizes = [4, 255], strides = [1, 1]} : vector<4x256xbf16> to vector<4x255xbf16>
    %cst_22 = arith.constant 0.000000e+00 : bf16
    %72 = vector.broadcast %cst_22 : bf16 to vector<4x1xbf16>
    %73 = tpu.concatenate %71, %72 in 1 : vector<4x255xbf16>, vector<4x1xbf16> -> vector<4x256xbf16>
    %c1_i32_23 = arith.constant 1 : i32
    %74 = vector.broadcast %c1_i32_23 : i32 to vector<1x256xi32>
    %75 = arith.addi %18, %74 : vector<1x256xi32>
    %c0_i32_24 = arith.constant 0 : i32
    %76 = vector.broadcast %c0_i32_24 : i32 to vector<1x256xi32>
    %77 = arith.cmpi sge, %75, %76 : vector<1x256xi32>
    %c1_i32_25 = arith.constant 1 : i32
    %78 = vector.broadcast %c1_i32_25 : i32 to vector<1x256xi32>
    %79 = arith.addi %18, %78 : vector<1x256xi32>
    %c16_i32_26 = arith.constant 16 : i32
    %80 = vector.broadcast %c16_i32_26 : i32 to vector<1x256xi32>
    %81 = arith.cmpi slt, %79, %80 : vector<1x256xi32>
    %82 = arith.andi %77, %81 : vector<1x256xi1>
    %cst_27 = arith.constant 0.000000e+00 : bf16
    %83 = vector.shape_cast %82 : vector<1x256xi1> to vector<1x256xi1>
    %84 = vector.broadcast %83 : vector<1x256xi1> to vector<4x256xi1>
    %85 = vector.broadcast %cst_27 : bf16 to vector<4x256xbf16>
    %86 = arith.select %84, %73, %85 : vector<4x256xi1>, vector<4x256xbf16>
    %87 = vector.extract_strided_slice %19 {offsets = [0, 15], sizes = [4, 241], strides = [1, 1]} : vector<4x256xbf16> to vector<4x241xbf16>
    %cst_28 = arith.constant 0.000000e+00 : bf16
    %88 = vector.broadcast %cst_28 : bf16 to vector<4x15xbf16>
    %89 = tpu.concatenate %87, %88 in 1 : vector<4x241xbf16>, vector<4x15xbf16> -> vector<4x256xbf16>
    %c-1_i32_29 = arith.constant -1 : i32
    %90 = vector.broadcast %c-1_i32_29 : i32 to vector<1x256xi32>
    %91 = arith.addi %18, %90 : vector<1x256xi32>
    %c0_i32_30 = arith.constant 0 : i32
    %92 = vector.broadcast %c0_i32_30 : i32 to vector<1x256xi32>
    %93 = arith.cmpi sge, %91, %92 : vector<1x256xi32>
    %c-1_i32_31 = arith.constant -1 : i32
    %94 = vector.broadcast %c-1_i32_31 : i32 to vector<1x256xi32>
    %95 = arith.addi %18, %94 : vector<1x256xi32>
    %c16_i32_32 = arith.constant 16 : i32
    %96 = vector.broadcast %c16_i32_32 : i32 to vector<1x256xi32>
    %97 = arith.cmpi slt, %95, %96 : vector<1x256xi32>
    %98 = arith.andi %93, %97 : vector<1x256xi1>
    %cst_33 = arith.constant 0.000000e+00 : bf16
    %99 = vector.shape_cast %98 : vector<1x256xi1> to vector<1x256xi1>
    %100 = vector.broadcast %99 : vector<1x256xi1> to vector<4x256xi1>
    %101 = vector.broadcast %cst_33 : bf16 to vector<4x256xbf16>
    %102 = arith.select %100, %89, %101 : vector<4x256xi1>, vector<4x256xbf16>
    %103 = vector.extract_strided_slice %19 {offsets = [0, 16], sizes = [4, 240], strides = [1, 1]} : vector<4x256xbf16> to vector<4x240xbf16>
    %cst_34 = arith.constant 0.000000e+00 : bf16
    %104 = vector.broadcast %cst_34 : bf16 to vector<4x16xbf16>
    %105 = tpu.concatenate %103, %104 in 1 : vector<4x240xbf16>, vector<4x16xbf16> -> vector<4x256xbf16>
    %106 = vector.extract_strided_slice %19 {offsets = [0, 17], sizes = [4, 239], strides = [1, 1]} : vector<4x256xbf16> to vector<4x239xbf16>
    %cst_35 = arith.constant 0.000000e+00 : bf16
    %107 = vector.broadcast %cst_35 : bf16 to vector<4x17xbf16>
    %108 = tpu.concatenate %106, %107 in 1 : vector<4x239xbf16>, vector<4x17xbf16> -> vector<4x256xbf16>
    %c1_i32_36 = arith.constant 1 : i32
    %109 = vector.broadcast %c1_i32_36 : i32 to vector<1x256xi32>
    %110 = arith.addi %18, %109 : vector<1x256xi32>
    %c0_i32_37 = arith.constant 0 : i32
    %111 = vector.broadcast %c0_i32_37 : i32 to vector<1x256xi32>
    %112 = arith.cmpi sge, %110, %111 : vector<1x256xi32>
    %c1_i32_38 = arith.constant 1 : i32
    %113 = vector.broadcast %c1_i32_38 : i32 to vector<1x256xi32>
    %114 = arith.addi %18, %113 : vector<1x256xi32>
    %c16_i32_39 = arith.constant 16 : i32
    %115 = vector.broadcast %c16_i32_39 : i32 to vector<1x256xi32>
    %116 = arith.cmpi slt, %114, %115 : vector<1x256xi32>
    %117 = arith.andi %112, %116 : vector<1x256xi1>
    %cst_40 = arith.constant 0.000000e+00 : bf16
    %118 = vector.shape_cast %117 : vector<1x256xi1> to vector<1x256xi1>
    %119 = vector.broadcast %118 : vector<1x256xi1> to vector<4x256xi1>
    %120 = vector.broadcast %cst_40 : bf16 to vector<4x256xbf16>
    %121 = arith.select %119, %108, %120 : vector<4x256xi1>, vector<4x256xbf16>
    %122 = tpu.concatenate %35, %38, %54, %70, %19, %86, %102, %105, %121 in 0 : vector<4x256xbf16>, vector<4x256xbf16>, vector<4x256xbf16>, vector<4x256xbf16>, vector<4x256xbf16>, vector<4x256xbf16>, vector<4x256xbf16>, vector<4x256xbf16>, vector<4x256xbf16> -> vector<36x256xbf16>
    %c0_41 = arith.constant 0 : index
    %c0_42 = arith.constant 0 : index
    %123 = vector.load %arg2[%c0_41, %c0_42] : memref<4x36xbf16, #tpu.memory_space<vmem>>, vector<4x36xbf16>
    %cst_43 = arith.constant dense<0.000000e+00> : vector<4x256xf32>
    %124 = tpu.matmul %123, %122, %cst_43 {dimension_numbers = #tpu.dot_dimension_numbers<[1], [0], [0], [1], [0, 0, 1, 1], [], []>} : vector<4x36xbf16>, vector<36x256xbf16>, vector<4x256xf32> -> vector<4x256xf32>
    %c0_44 = arith.constant 0 : index
    %c0_45 = arith.constant 0 : index
    %125 = vector.load %arg3[%c0_44, %c0_45] : memref<4x1xf32, #tpu.memory_space<vmem>>, vector<4x1xf32>
    %126 = vector.broadcast %125 : vector<4x1xf32> to vector<4x256xf32>
    %127 = arith.mulf %124, %126 : vector<4x256xf32>
    %c0_46 = arith.constant 0 : index
    %c0_47 = arith.constant 0 : index
    %128 = vector.load %arg4[%c0_46, %c0_47] : memref<4x1xf32, #tpu.memory_space<vmem>>, vector<4x1xf32>
    %129 = vector.broadcast %128 : vector<4x1xf32> to vector<4x256xf32>
    %130 = arith.addf %127, %129 : vector<4x256xf32>
    %cst_48 = arith.constant 0.000000e+00 : f32
    %131 = vector.broadcast %cst_48 : f32 to vector<4x256xf32>
    %132 = arith.maximumf %130, %131 : vector<4x256xf32>
    %133 = arith.truncf %132 : vector<4x256xf32> to vector<4x256xbf16>
    %cst_49 = arith.constant 0.000000e+00 : bf16
    %134 = vector.broadcast %cst_49 : bf16 to vector<4x17xbf16>
    %135 = vector.extract_strided_slice %133 {offsets = [0, 0], sizes = [4, 239], strides = [1, 1]} : vector<4x256xbf16> to vector<4x239xbf16>
    %136 = tpu.concatenate %134, %135 in 1 : vector<4x17xbf16>, vector<4x239xbf16> -> vector<4x256xbf16>
    %c-1_i32_50 = arith.constant -1 : i32
    %137 = vector.broadcast %c-1_i32_50 : i32 to vector<1x256xi32>
    %138 = arith.addi %18, %137 : vector<1x256xi32>
    %c0_i32_51 = arith.constant 0 : i32
    %139 = vector.broadcast %c0_i32_51 : i32 to vector<1x256xi32>
    %140 = arith.cmpi sge, %138, %139 : vector<1x256xi32>
    %c-1_i32_52 = arith.constant -1 : i32
    %141 = vector.broadcast %c-1_i32_52 : i32 to vector<1x256xi32>
    %142 = arith.addi %18, %141 : vector<1x256xi32>
    %c16_i32_53 = arith.constant 16 : i32
    %143 = vector.broadcast %c16_i32_53 : i32 to vector<1x256xi32>
    %144 = arith.cmpi slt, %142, %143 : vector<1x256xi32>
    %145 = arith.andi %140, %144 : vector<1x256xi1>
    %cst_54 = arith.constant 0.000000e+00 : bf16
    %146 = vector.shape_cast %145 : vector<1x256xi1> to vector<1x256xi1>
    %147 = vector.broadcast %146 : vector<1x256xi1> to vector<4x256xi1>
    %148 = vector.broadcast %cst_54 : bf16 to vector<4x256xbf16>
    %149 = arith.select %147, %136, %148 : vector<4x256xi1>, vector<4x256xbf16>
    %cst_55 = arith.constant 0.000000e+00 : bf16
    %150 = vector.broadcast %cst_55 : bf16 to vector<4x16xbf16>
    %151 = vector.extract_strided_slice %133 {offsets = [0, 0], sizes = [4, 240], strides = [1, 1]} : vector<4x256xbf16> to vector<4x240xbf16>
    %152 = tpu.concatenate %150, %151 in 1 : vector<4x16xbf16>, vector<4x240xbf16> -> vector<4x256xbf16>
    %cst_56 = arith.constant 0.000000e+00 : bf16
    %153 = vector.broadcast %cst_56 : bf16 to vector<4x15xbf16>
    %154 = vector.extract_strided_slice %133 {offsets = [0, 0], sizes = [4, 241], strides = [1, 1]} : vector<4x256xbf16> to vector<4x241xbf16>
    %155 = tpu.concatenate %153, %154 in 1 : vector<4x15xbf16>, vector<4x241xbf16> -> vector<4x256xbf16>
    %c1_i32_57 = arith.constant 1 : i32
    %156 = vector.broadcast %c1_i32_57 : i32 to vector<1x256xi32>
    %157 = arith.addi %18, %156 : vector<1x256xi32>
    %c0_i32_58 = arith.constant 0 : i32
    %158 = vector.broadcast %c0_i32_58 : i32 to vector<1x256xi32>
    %159 = arith.cmpi sge, %157, %158 : vector<1x256xi32>
    %c1_i32_59 = arith.constant 1 : i32
    %160 = vector.broadcast %c1_i32_59 : i32 to vector<1x256xi32>
    %161 = arith.addi %18, %160 : vector<1x256xi32>
    %c16_i32_60 = arith.constant 16 : i32
    %162 = vector.broadcast %c16_i32_60 : i32 to vector<1x256xi32>
    %163 = arith.cmpi slt, %161, %162 : vector<1x256xi32>
    %164 = arith.andi %159, %163 : vector<1x256xi1>
    %cst_61 = arith.constant 0.000000e+00 : bf16
    %165 = vector.shape_cast %164 : vector<1x256xi1> to vector<1x256xi1>
    %166 = vector.broadcast %165 : vector<1x256xi1> to vector<4x256xi1>
    %167 = vector.broadcast %cst_61 : bf16 to vector<4x256xbf16>
    %168 = arith.select %166, %155, %167 : vector<4x256xi1>, vector<4x256xbf16>
    %cst_62 = arith.constant 0.000000e+00 : bf16
    %169 = vector.broadcast %cst_62 : bf16 to vector<4x1xbf16>
    %170 = vector.extract_strided_slice %133 {offsets = [0, 0], sizes = [4, 255], strides = [1, 1]} : vector<4x256xbf16> to vector<4x255xbf16>
    %171 = tpu.concatenate %169, %170 in 1 : vector<4x1xbf16>, vector<4x255xbf16> -> vector<4x256xbf16>
    %c-1_i32_63 = arith.constant -1 : i32
    %172 = vector.broadcast %c-1_i32_63 : i32 to vector<1x256xi32>
    %173 = arith.addi %18, %172 : vector<1x256xi32>
    %c0_i32_64 = arith.constant 0 : i32
    %174 = vector.broadcast %c0_i32_64 : i32 to vector<1x256xi32>
    %175 = arith.cmpi sge, %173, %174 : vector<1x256xi32>
    %c-1_i32_65 = arith.constant -1 : i32
    %176 = vector.broadcast %c-1_i32_65 : i32 to vector<1x256xi32>
    %177 = arith.addi %18, %176 : vector<1x256xi32>
    %c16_i32_66 = arith.constant 16 : i32
    %178 = vector.broadcast %c16_i32_66 : i32 to vector<1x256xi32>
    %179 = arith.cmpi slt, %177, %178 : vector<1x256xi32>
    %180 = arith.andi %175, %179 : vector<1x256xi1>
    %cst_67 = arith.constant 0.000000e+00 : bf16
    %181 = vector.shape_cast %180 : vector<1x256xi1> to vector<1x256xi1>
    %182 = vector.broadcast %181 : vector<1x256xi1> to vector<4x256xi1>
    %183 = vector.broadcast %cst_67 : bf16 to vector<4x256xbf16>
    %184 = arith.select %182, %171, %183 : vector<4x256xi1>, vector<4x256xbf16>
    %185 = vector.extract_strided_slice %133 {offsets = [0, 1], sizes = [4, 255], strides = [1, 1]} : vector<4x256xbf16> to vector<4x255xbf16>
    %cst_68 = arith.constant 0.000000e+00 : bf16
    %186 = vector.broadcast %cst_68 : bf16 to vector<4x1xbf16>
    %187 = tpu.concatenate %185, %186 in 1 : vector<4x255xbf16>, vector<4x1xbf16> -> vector<4x256xbf16>
    %c1_i32_69 = arith.constant 1 : i32
    %188 = vector.broadcast %c1_i32_69 : i32 to vector<1x256xi32>
    %189 = arith.addi %18, %188 : vector<1x256xi32>
    %c0_i32_70 = arith.constant 0 : i32
    %190 = vector.broadcast %c0_i32_70 : i32 to vector<1x256xi32>
    %191 = arith.cmpi sge, %189, %190 : vector<1x256xi32>
    %c1_i32_71 = arith.constant 1 : i32
    %192 = vector.broadcast %c1_i32_71 : i32 to vector<1x256xi32>
    %193 = arith.addi %18, %192 : vector<1x256xi32>
    %c16_i32_72 = arith.constant 16 : i32
    %194 = vector.broadcast %c16_i32_72 : i32 to vector<1x256xi32>
    %195 = arith.cmpi slt, %193, %194 : vector<1x256xi32>
    %196 = arith.andi %191, %195 : vector<1x256xi1>
    %cst_73 = arith.constant 0.000000e+00 : bf16
    %197 = vector.shape_cast %196 : vector<1x256xi1> to vector<1x256xi1>
    %198 = vector.broadcast %197 : vector<1x256xi1> to vector<4x256xi1>
    %199 = vector.broadcast %cst_73 : bf16 to vector<4x256xbf16>
    %200 = arith.select %198, %187, %199 : vector<4x256xi1>, vector<4x256xbf16>
    %201 = vector.extract_strided_slice %133 {offsets = [0, 15], sizes = [4, 241], strides = [1, 1]} : vector<4x256xbf16> to vector<4x241xbf16>
    %cst_74 = arith.constant 0.000000e+00 : bf16
    %202 = vector.broadcast %cst_74 : bf16 to vector<4x15xbf16>
    %203 = tpu.concatenate %201, %202 in 1 : vector<4x241xbf16>, vector<4x15xbf16> -> vector<4x256xbf16>
    %c-1_i32_75 = arith.constant -1 : i32
    %204 = vector.broadcast %c-1_i32_75 : i32 to vector<1x256xi32>
    %205 = arith.addi %18, %204 : vector<1x256xi32>
    %c0_i32_76 = arith.constant 0 : i32
    %206 = vector.broadcast %c0_i32_76 : i32 to vector<1x256xi32>
    %207 = arith.cmpi sge, %205, %206 : vector<1x256xi32>
    %c-1_i32_77 = arith.constant -1 : i32
    %208 = vector.broadcast %c-1_i32_77 : i32 to vector<1x256xi32>
    %209 = arith.addi %18, %208 : vector<1x256xi32>
    %c16_i32_78 = arith.constant 16 : i32
    %210 = vector.broadcast %c16_i32_78 : i32 to vector<1x256xi32>
    %211 = arith.cmpi slt, %209, %210 : vector<1x256xi32>
    %212 = arith.andi %207, %211 : vector<1x256xi1>
    %cst_79 = arith.constant 0.000000e+00 : bf16
    %213 = vector.shape_cast %212 : vector<1x256xi1> to vector<1x256xi1>
    %214 = vector.broadcast %213 : vector<1x256xi1> to vector<4x256xi1>
    %215 = vector.broadcast %cst_79 : bf16 to vector<4x256xbf16>
    %216 = arith.select %214, %203, %215 : vector<4x256xi1>, vector<4x256xbf16>
    %217 = vector.extract_strided_slice %133 {offsets = [0, 16], sizes = [4, 240], strides = [1, 1]} : vector<4x256xbf16> to vector<4x240xbf16>
    %cst_80 = arith.constant 0.000000e+00 : bf16
    %218 = vector.broadcast %cst_80 : bf16 to vector<4x16xbf16>
    %219 = tpu.concatenate %217, %218 in 1 : vector<4x240xbf16>, vector<4x16xbf16> -> vector<4x256xbf16>
    %220 = vector.extract_strided_slice %133 {offsets = [0, 17], sizes = [4, 239], strides = [1, 1]} : vector<4x256xbf16> to vector<4x239xbf16>
    %cst_81 = arith.constant 0.000000e+00 : bf16
    %221 = vector.broadcast %cst_81 : bf16 to vector<4x17xbf16>
    %222 = tpu.concatenate %220, %221 in 1 : vector<4x239xbf16>, vector<4x17xbf16> -> vector<4x256xbf16>
    %c1_i32_82 = arith.constant 1 : i32
    %223 = vector.broadcast %c1_i32_82 : i32 to vector<1x256xi32>
    %224 = arith.addi %18, %223 : vector<1x256xi32>
    %c0_i32_83 = arith.constant 0 : i32
    %225 = vector.broadcast %c0_i32_83 : i32 to vector<1x256xi32>
    %226 = arith.cmpi sge, %224, %225 : vector<1x256xi32>
    %c1_i32_84 = arith.constant 1 : i32
    %227 = vector.broadcast %c1_i32_84 : i32 to vector<1x256xi32>
    %228 = arith.addi %18, %227 : vector<1x256xi32>
    %c16_i32_85 = arith.constant 16 : i32
    %229 = vector.broadcast %c16_i32_85 : i32 to vector<1x256xi32>
    %230 = arith.cmpi slt, %228, %229 : vector<1x256xi32>
    %231 = arith.andi %226, %230 : vector<1x256xi1>
    %cst_86 = arith.constant 0.000000e+00 : bf16
    %232 = vector.shape_cast %231 : vector<1x256xi1> to vector<1x256xi1>
    %233 = vector.broadcast %232 : vector<1x256xi1> to vector<4x256xi1>
    %234 = vector.broadcast %cst_86 : bf16 to vector<4x256xbf16>
    %235 = arith.select %233, %222, %234 : vector<4x256xi1>, vector<4x256xbf16>
    %236 = tpu.concatenate %149, %152, %168, %184, %133, %200, %216, %219, %235 in 0 : vector<4x256xbf16>, vector<4x256xbf16>, vector<4x256xbf16>, vector<4x256xbf16>, vector<4x256xbf16>, vector<4x256xbf16>, vector<4x256xbf16>, vector<4x256xbf16>, vector<4x256xbf16> -> vector<36x256xbf16>
    %c0_87 = arith.constant 0 : index
    %c0_88 = arith.constant 0 : index
    %237 = vector.load %arg5[%c0_87, %c0_88] : memref<4x36xbf16, #tpu.memory_space<vmem>>, vector<4x36xbf16>
    %cst_89 = arith.constant dense<0.000000e+00> : vector<4x256xf32>
    %238 = tpu.matmul %237, %236, %cst_89 {dimension_numbers = #tpu.dot_dimension_numbers<[1], [0], [0], [1], [0, 0, 1, 1], [], []>} : vector<4x36xbf16>, vector<36x256xbf16>, vector<4x256xf32> -> vector<4x256xf32>
    %c0_90 = arith.constant 0 : index
    %c0_91 = arith.constant 0 : index
    %239 = vector.load %arg6[%c0_90, %c0_91] : memref<4x1xf32, #tpu.memory_space<vmem>>, vector<4x1xf32>
    %240 = vector.broadcast %239 : vector<4x1xf32> to vector<4x256xf32>
    %241 = arith.mulf %238, %240 : vector<4x256xf32>
    %c0_92 = arith.constant 0 : index
    %c0_93 = arith.constant 0 : index
    %242 = vector.load %arg7[%c0_92, %c0_93] : memref<4x1xf32, #tpu.memory_space<vmem>>, vector<4x1xf32>
    %243 = vector.broadcast %242 : vector<4x1xf32> to vector<4x256xf32>
    %244 = arith.addf %241, %243 : vector<4x256xf32>
    %245 = arith.addf %244, %1 : vector<4x256xf32>
    %cst_94 = arith.constant 0.000000e+00 : f32
    %246 = vector.broadcast %cst_94 : f32 to vector<4x256xf32>
    %247 = arith.maximumf %245, %246 : vector<4x256xf32>
    %c0_95 = arith.constant 0 : index
    %c0_96 = arith.constant 0 : index
    %c0_97 = arith.constant 0 : index
    %248 = vector.load %arg8[%c0_95, %c0_96, %c0_97] : memref<1x4x256xf32, #tpu.memory_space<vmem>>, vector<1x4x256xf32>
    %249 = vector.shape_cast %248 : vector<1x4x256xf32> to vector<4x256xf32>
    %250 = vector.shape_cast %247 : vector<4x256xf32> to vector<1x4x256xf32>
    tpu.vector_store %arg8[%c0_95, %c0_96, %c0_97], %250 {strides = array<i32>} : memref<1x4x256xf32, #tpu.memory_space<vmem>>, vector<1x4x256xf32>,
    return
  }
  func.func @transform_0(%arg0: i32) -> (i32, i32, i32) {
    %c0_i32 = arith.constant 0 : i32
    %c0_i32_0 = arith.constant 0 : i32
    %c0_i32_1 = arith.constant 0 : i32
    return %arg0, %c0_i32, %c0_i32_0 : i32, i32, i32
  }
  func.func @transform_1(%arg0: i32) -> (i32, i32) {
    %c0_i32 = arith.constant 0 : i32
    %c0_i32_0 = arith.constant 0 : i32
    %c0_i32_1 = arith.constant 0 : i32
    return %c0_i32, %c0_i32_0 : i32, i32
  }
  func.func @transform_2(%arg0: i32) -> (i32, i32) {
    %c0_i32 = arith.constant 0 : i32
    %c0_i32_0 = arith.constant 0 : i32
    %c0_i32_1 = arith.constant 0 : i32
    return %c0_i32, %c0_i32_0 : i32, i32
  }
  func.func @transform_3(%arg0: i32) -> (i32, i32) {
    %c0_i32 = arith.constant 0 : i32
    %c0_i32_0 = arith.constant 0 : i32
    %c0_i32_1 = arith.constant 0 : i32
    return %c0_i32, %c0_i32_0 : i32, i32
  }
  func.func @transform_4(%arg0: i32) -> (i32, i32) {
    %c0_i32 = arith.constant 0 : i32
    %c0_i32_0 = arith.constant 0 : i32
    %c0_i32_1 = arith.constant 0 : i32
    return %c0_i32, %c0_i32_0 : i32, i32
  }
  func.func @transform_5(%arg0: i32) -> (i32, i32) {
    %c0_i32 = arith.constant 0 : i32
    %c0_i32_0 = arith.constant 0 : i32
    %c0_i32_1 = arith.constant 0 : i32
    return %c0_i32, %c0_i32_0 : i32, i32
  }
  func.func @transform_6(%arg0: i32) -> (i32, i32) {
    %c0_i32 = arith.constant 0 : i32
    %c0_i32_0 = arith.constant 0 : i32
    %c0_i32_1 = arith.constant 0 : i32
    return %c0_i32, %c0_i32_0 : i32, i32
  }
  func.func @transform_7(%arg0: i32) -> (i32, i32, i32) {
    %c0_i32 = arith.constant 0 : i32
    %c0_i32_0 = arith.constant 0 : i32
    %c0_i32_1 = arith.constant 0 : i32
    return %arg0, %c0_i32, %c0_i32_0 : i32, i32, i32
  }
}

</mosaic_0001>

<bundles_post_ra>
// kernel: tpu_custom_call.1
= control target key start
LH: loop header
LB: loop body
LE: loop exit
PB: predicated region body
PF: predicated region fallthrough
CT: control target
= control target key end

     0   :  { %12 = vsyncpa [#allocation3], 0  ;;  %s2059_s0 = inlined_call_operand.hbm [shape: f32[2,4,256], index: 0, kind: input, shape index: {}]   ;;  %s2060_s1 = inlined_call_operand.hbm [shape: bf16[4,36], index: 1, kind: input, shape index: {}]   ;;  %s2061_s2 = inlined_call_operand.hbm [shape: f32[4,1], index: 2, kind: input, shape index: {}]   ;;  %s2062_s3 = inlined_call_operand.hbm [shape: f32[4,1], index: 3, kind: input, shape index: {}]   ;;  %s2063_s4 = inlined_call_operand.hbm [shape: bf16[4,36], index: 4, kind: input, shape index: {}]   ;;  %s2064_s5 = inlined_call_operand.hbm [shape: f32[4,1], index: 5, kind: input, shape index: {}]   ;;  %s2065_s6 = inlined_call_operand.hbm [shape: f32[4,1], index: 6, kind: input, shape index: {}]   ;;  %s2066_s7 = inlined_call_operand.hbm [shape: f32[2,4,256], index: 7, kind: output, shape index: {}]  }
   0x1   :  { %14 = vsyncpa [#allocation3 + $0x1], 0 }
   0x2   :  { %15 = vsyncpa [#allocation6], 0 }
   0x3   :  { %16 = vsyncpa [#allocation9], 0 }
   0x4   :  { %17 = vsyncpa [#allocation12], 0 }
   0x5   :  { %18 = vsyncpa [#allocation4], 0 }
   0x6   :  { %20 = vsyncpa [#allocation4 + $0x1], 0  ;;  %s1522_s24 = smov 0   ;;  %s1524_s25 = smov 0  }
   0x7   :  { %s1526_s26 = smov 0   ;;  %s1528_s27 = smov 0  }
   0x8 LB: > { %s1465_s28 = smov [#allocation5]   ;;  %s1543_s30 = sadd.s32 4294967295, %s1463_s27   ;;  %s1463_s27 = sphi %s1528_s27, %s2092_s27   ;;  %s1459_s26 = sphi %s1526_s26, %s2091_s26   ;;  %s1455_s25 = sphi %s1524_s25, %s2090_s25   ;;  %s1451_s24 = sphi %s1522_s24, %s2089_s24  }
   0x9   : > { %s222_s29 = sshll.u32 %s1465_s28, 4  ;;  %p1037_p0 = scmp.ge.s32.totalorder %s1463_s27, 1  ;;  %s1548_s29 = int_to_ptr.vmem [resolvable:$true] %s222_s29 }
   0xa   : > { %p2067_p1 = scmp.eq.s32.totalorder %s1543_s30, 0  ;;  %p209_p2 = scmp.lt.s32.totalorder %s1463_s27, 3 }
   0xb   : > { %s1466_s9 = smov [#allocation8]   ;;  %s1467_s11 = smov [#allocation11]  }
   0xc   : > { %p1550_p3 = pnand %p1037_p0, %p209_p2  ;;  %s244_s10 = sshll.u32 %s1466_s9, 4  ;;  %s1557_s10 = int_to_ptr.vmem [resolvable:$true] %s244_s10 }
   0xd   : > { %s266_s12 = sshll.u32 %s1467_s11, 4  ;;  %s1468_s14 = smov [#allocation7]   ;;  %s1565_s12 = int_to_ptr.vmem [resolvable:$true] %s266_s12 }
   0xe   : > { %s2070_s8 = scalar_select %p1550_p3, 1, 0 }
   0xf   : > { %p1096_p5 = pneg %p1550_p3  ;;  %s1567_s15 = sshll.u32 %s1468_s14, 4  ;;  %s234_s15 = int_to_ptr.vmem [resolvable:$true] %s1567_s15 }
  0x10   : > { %s1187_s18 = scalar_lea.hbm %s2060_s1, 32 }
  0x11   : > { %p1561_p6 = pnand %p1096_p5, %p2067_p1  ;;  %p1188_p7 = scmp.ne.s32.totalorder %s2060_s1, %s1187_s18 }
  0x12   : > { %p1194_p11 = scmp.lt.u32.totalorder %s1187_s18, %s2060_s1 }
  0x13   : > { %p1577_p8 = pneg %p1561_p6 }
  0x15   : > { %p1190_p9 = pnand %p1577_p8, %p1188_p7 }
  0x17   : > { %p1191_p10 = pneg %p1190_p9 }
  0x19   : > { %p1196_p12 = pnand %p1194_p11, %p1191_p10 }
  0x1b   : > { %1199 = shalt.err (!%p1196_p12)
}
  0x1c   : > { %s1200_s28 = scalar_lea.vmem %s1548_s29, 32  ;;  %p1208_p5 = scmp.lt.s32.totalorder %s1548_s29, %s1548_s29 }
  0x1d   : > { %p1201_p13 = scmp.ne.s32.totalorder %s1548_s29, %s1200_s28  ;;  %p1209_p4 = scmp.lt.s32.totalorder %s1200_s28, %s1200_s28 }
  0x1f   : > { %p1203_p0 = pnand %p1201_p13, %p1577_p8  ;;  %p1210_p7 = por %p1209_p4, %p1208_p5 }
  0x21   : > { %p1204_p2 = pneg %p1203_p0 }
  0x23   : > { %p1211_p9 = pnand %p1210_p7, %p1204_p2 }
  0x25   : > { %1214 = shalt.err (!%p1211_p9)
}
  0x26   : > { %1099 = dma.hbm_to_vmem [thread:$0]  (!%p1561_p6), %s2060_s1, 32, %s1548_s29, [#allocation6]  }
  0x27   : > { %s1215_s17 = scalar_lea.hbm %s2062_s3, 64 }
  0x28   : > { %p1216_p10 = scmp.ne.s32.totalorder %s2062_s3, %s1215_s17  ;;  %p1222_p12 = scmp.lt.u32.totalorder %s1215_s17, %s2062_s3 }
  0x2a   : > { %p1218_p4 = pnand %p1216_p10, %p1577_p8 }
  0x2c   : > { %p1219_p11 = pneg %p1218_p4 }
  0x2e   : > { %p1224_p13 = pnand %p1222_p12, %p1219_p11 }
  0x30   : > { %1227 = shalt.err (!%p1224_p13)
}
  0x31   : > { %s1228_s29 = scalar_lea.vmem %s1557_s10, 64  ;;  %p1236_p7 = scmp.lt.s32.totalorder %s1557_s10, %s1557_s10 }
  0x32   : > { %p1229_p0 = scmp.ne.s32.totalorder %s1557_s10, %s1228_s29  ;;  %p1237_p9 = scmp.lt.s32.totalorder %s1228_s29, %s1228_s29 }
  0x34   : > { %p1231_p2 = pnand %p1229_p0, %p1577_p8  ;;  %p1238_p10 = por %p1237_p9, %p1236_p7 }
  0x36   : > { %p1232_p5 = pneg %p1231_p2 }
  0x38   : > { %p1239_p4 = pnand %p1238_p10, %p1232_p5 }
  0x3a   : > { %1242 = shalt.err (!%p1239_p4)
}
  0x3b   : > { %1105 = dma.hbm_to_vmem [thread:$0]  (!%p1561_p6), %s2062_s3, 64, %s1557_s10, [#allocation9]  }
  0x3c   : > { %s1243_s14 = scalar_lea.hbm %s2064_s5, 64 }
  0x3d   : > { %p1244_p11 = scmp.ne.s32.totalorder %s2064_s5, %s1243_s14  ;;  %p1250_p0 = scmp.lt.u32.totalorder %s1243_s14, %s2064_s5 }
  0x3f   : > { %p1246_p12 = pnand %p1244_p11, %p1577_p8 }
  0x41   : > { %p1247_p13 = pneg %p1246_p12 }
  0x43   : > { %p1252_p2 = pnand %p1250_p0, %p1247_p13 }
  0x45   : > { %1255 = shalt.err (!%p1252_p2)
}
  0x46   : > { %s1256_s10 = scalar_lea.vmem %s1565_s12, 64  ;;  %p1264_p10 = scmp.lt.s32.totalorder %s1565_s12, %s1565_s12 }
  0x47   : > { %p1257_p5 = scmp.ne.s32.totalorder %s1565_s12, %s1256_s10  ;;  %p1265_p4 = scmp.lt.s32.totalorder %s1256_s10, %s1256_s10 }
  0x49   : > { %p1259_p7 = pnand %p1257_p5, %p1577_p8  ;;  %p1266_p11 = por %p1265_p4, %p1264_p10 }
  0x4b   : > { %p1260_p9 = pneg %p1259_p7 }
  0x4d   : > { %p1267_p12 = pnand %p1266_p11, %p1260_p9 }
  0x4f   : > { %1270 = shalt.err (!%p1267_p12)
}
  0x50   : > { %1111 = dma.hbm_to_vmem [thread:$0]  (!%p1561_p6), %s2064_s5, 64, %s1565_s12, [#allocation12]  }
  0x51   : > { %s1469_s29 = smov [#allocation10]   ;;  %s1271_s11 = scalar_lea.hbm %s2061_s2, 64 }
  0x52   : > { %s255_s23 = sshll.u32 %s1469_s29, 4  ;;  %p1272_p13 = scmp.ne.s32.totalorder %s2061_s2, %s1271_s11  ;;  %s256_s23 = int_to_ptr.vmem [resolvable:$true] %s255_s23 }
  0x53   : > { %p1278_p5 = scmp.lt.u32.totalorder %s1271_s11, %s2061_s2 }
  0x54   : > { %p1274_p0 = pnand %p1272_p13, %p1577_p8 }
  0x56   : > { %p1275_p2 = pneg %p1274_p0 }
  0x58   : > { %p1280_p7 = pnand %p1278_p5, %p1275_p2 }
  0x5a   : > { %1283 = shalt.err (!%p1280_p7)
}
  0x5b   : > { %s1284_s12 = scalar_lea.vmem %s234_s15, 64  ;;  %p1292_p11 = scmp.lt.s32.totalorder %s234_s15, %s234_s15 }
  0x5c   : > { %p1285_p9 = scmp.ne.s32.totalorder %s234_s15, %s1284_s12  ;;  %p1293_p12 = scmp.lt.s32.totalorder %s1284_s12, %s1284_s12 }
  0x5e   : > { %p1287_p10 = pnand %p1285_p9, %p1577_p8  ;;  %p1294_p1 = por %p1293_p12, %p1292_p11 }
  0x60   : > { %p1288_p4 = pneg %p1287_p10 }
  0x62   : > { %p1295_p3 = pnand %p1294_p1, %p1288_p4 }
  0x64   : > { %1298 = shalt.err (!%p1295_p3)
}
  0x65   : > { %1102 = dma.hbm_to_vmem [thread:$0]  (!%p1561_p6), %s2061_s2, 64, %s234_s15, [#allocation6]  }
  0x66   : > { %s1299_s29 = scalar_lea.hbm %s2063_s4, 32 }
  0x67   : > { %p1300_p13 = scmp.ne.s32.totalorder %s2063_s4, %s1299_s29  ;;  %p1306_p3 = scmp.lt.u32.totalorder %s1299_s29, %s2063_s4 }
  0x69   : > { %p1302_p0 = pnand %p1300_p13, %p1577_p8 }
  0x6b   : > { %p1303_p1 = pneg %p1302_p0 }
  0x6d   : > { %p1308_p2 = pnand %p1306_p3, %p1303_p1 }
  0x6f   : > { %1311 = shalt.err (!%p1308_p2)
}
  0x70   : > { %s1312_s16 = scalar_lea.vmem %s256_s23, 32  ;;  %p1320_p10 = scmp.lt.s32.totalorder %s256_s23, %s256_s23 }
  0x71   : > { %p1313_p5 = scmp.ne.s32.totalorder %s256_s23, %s1312_s16  ;;  %p1321_p4 = scmp.lt.s32.totalorder %s1312_s16, %s1312_s16 }
  0x73   : > { %p1315_p7 = pnand %p1313_p5, %p1577_p8  ;;  %p1322_p11 = por %p1321_p4, %p1320_p10 }
  0x75   : > { %p1316_p9 = pneg %p1315_p7 }
  0x77   : > { %p1323_p12 = pnand %p1322_p11, %p1316_p9 }
  0x79   : > { %1326 = shalt.err (!%p1323_p12)
}
  0x7a   : > { %1108 = dma.hbm_to_vmem [thread:$0]  (!%p1561_p6), %s2063_s4, 32, %s256_s23, [#allocation9]  }
  0x7b   : > { %s1470_s18 = smov [#allocation13]   ;;  %s1327_s20 = scalar_lea.hbm %s2065_s6, 64 }
  0x7c   : > { %s277_s12 = sshll.u32 %s1470_s18, 4  ;;  %p1328_p13 = scmp.ne.s32.totalorder %s2065_s6, %s1327_s20  ;;  %s278_s12 = int_to_ptr.vmem [resolvable:$true] %s277_s12 }
  0x7d   : > { %p1334_p3 = scmp.lt.u32.totalorder %s1327_s20, %s2065_s6 }
  0x7e   : > { %p1330_p0 = pnand %p1328_p13, %p1577_p8 }
  0x80   : > { %p1331_p1 = pneg %p1330_p0 }
  0x82   : > { %p1336_p2 = pnand %p1334_p3, %p1331_p1 }
  0x84   : > { %1339 = shalt.err (!%p1336_p2)
}
  0x85   : > { %s1340_s23 = scalar_lea.vmem %s278_s12, 64  ;;  %p1348_p10 = scmp.lt.s32.totalorder %s278_s12, %s278_s12 }
  0x86   : > { %p1341_p5 = scmp.ne.s32.totalorder %s278_s12, %s1340_s23  ;;  %p1349_p4 = scmp.lt.s32.totalorder %s1340_s23, %s1340_s23 }
  0x88   : > { %p1343_p7 = pnand %p1341_p5, %p1577_p8  ;;  %p1350_p11 = por %p1349_p4, %p1348_p10 }
  0x8a   : > { %p1344_p9 = pneg %p1343_p7 }
  0x8c   : > { %p1351_p12 = pnand %p1350_p11, %p1344_p9 }
  0x8e   : > { %1354 = shalt.err (!%p1351_p12)
}
  0x8f   : > { %1114 = dma.hbm_to_vmem [thread:$0]  (!%p1561_p6), %s2065_s6, 64, %s278_s12, [#allocation12]  }
  0x90   : > { %s1036_s21 = sadd.s32 4294967294, %s1463_s27   ;;  %s1701_s13 = sadd.s32 1, %s1463_s27  }
  0x91   : > { %s30_s16 = ssub.s32 %s1463_s27, %s1701_s13  ;;  %s33_s15 = sadd.s32 1, %s1459_s26 }
  0x92   : > { %p31_p8 = scmp.eq.s32.totalorder %s30_s16, 0  ;;  %p40_p13 = scmp.ne.s32.totalorder %s1459_s26, %s1455_s25 }
  0x93   : > { %p41_p0 = scmp.eq.s32.totalorder %s1463_s27, 0  ;;  %p46_p1 = scmp.ne.s32.totalorder %s1455_s25, %s1451_s24 }
  0x94   : > { %s1712_s17 = scalar_select %p31_p8, %s1459_s26, %s33_s15  }
  0x95   : > { %p1714_p3 = por %p41_p0, %p40_p13  ;;  %p2074_p2 = scmp.eq.s32.totalorder %s1543_s30, 0 }
  0x96   : > { %p196_p5 = scmp.eq.s32.totalorder %s1543_s30, 1  ;;  %p202_p7 = scmp.eq.s32.totalorder %s1036_s21, 1 }
  0x97   : > { %p1720_p6 = por %p2074_p2, %p46_p1  ;;  %p1129_p9 = scmp.lt.s32.totalorder %s1463_s27, 2 }
  0x98   : > { %s288_s19 = sand.u32 1, %s1459_s26   ;;  %p1727_p10 = por %p196_p5, %p40_p13 }
  0x99   : > { %p1731_p4 = por %p202_p7, %p46_p1  ;;  %s1045_s22 = sshll.u32 %s288_s19, 3 }
  0x9a   : > { %s2076_s10 = scalar_select %p1727_p10, 1, 0 }
  0x9b   : > { %s2077_s20 = scalar_select %p1731_p4, 1, 0 }
  0x9c   : > { %s1066_s29 = sshll.u32 %s1463_s27, 7  ;;  %s292_s11 = scalar_lea.vmem [#allocation2], %s1045_s22 }
  0x9d   : > { %s1739_s23 = scalar_lea.hbm %s2059_s0, %s1066_s29  ;;  %s300_s14 = sshll.u32 %s292_s11, 4  ;;  %s1741_s14 = int_to_ptr.vmem [resolvable:$true] %s300_s14 }
  0x9e   : > { %p1745_p11 = pnand %p1129_p9, %p1714_p3  ;;  %s289_s16 = scalar_lea.sflag [#allocation3], %s288_s19 }
  0x9f   : > { %s1355_s15 = scalar_lea.hbm %s1739_s23, 128  ;;  %s1360_s28 = scalar_lea.hbm %s2059_s0, 256 }
  0xa0   : > { %p1356_p12 = scmp.ne.s32.totalorder %s1739_s23, %s1355_s15  ;;  %p1357_p8 = pneg %p1745_p11 }
  0xa1   : > { %p1361_p1 = scmp.lt.u32.totalorder %s1739_s23, %s2059_s0  ;;  %p1362_p3 = scmp.lt.u32.totalorder %s1360_s28, %s1355_s15 }
  0xa2   : > { %p1358_p13 = pnand %p1357_p8, %p1356_p12  ;;  %p1364_p5 = scmp.lt.u32.totalorder %s1355_s15, %s1739_s23 }
  0xa3   : > { %p1363_p2 = por %p1362_p3, %p1361_p1 }
  0xa4   : > { %p1359_p0 = pneg %p1358_p13 }
  0xa5   : > { %p1365_p7 = por %p1364_p5, %p1363_p2 }
  0xa7   : > { %p1366_p9 = pnand %p1365_p7, %p1359_p0 }
  0xa9   : > { %1369 = shalt.err (!%p1366_p9)
}
  0xaa   : > { %s1370_s19 = scalar_lea.vmem %s1741_s14, 128  ;;  %s1471_s11 = smov [#allocation2]  }
  0xab   : > { %p1371_p12 = scmp.ne.s32.totalorder %s1741_s14, %s1370_s19  ;;  %s1375_s22 = sshll.u32 %s1471_s11, 4  ;;  %s1376_s22 = int_to_ptr.vmem [resolvable:$false] %s1375_s22 }
  0xac   : > { %s1377_s29 = scalar_lea.vmem %s1376_s22, 256  ;;  %p1378_p10 = scmp.lt.s32.totalorder %s1741_s14, %s1376_s22 }
  0xad   : > { %p1373_p13 = pnand %p1371_p12, %p1357_p8  ;;  %p1379_p1 = scmp.lt.s32.totalorder %s1377_s29, %s1370_s19 }
  0xaf   : > { %p1374_p4 = pneg %p1373_p13  ;;  %p1380_p3 = por %p1379_p1, %p1378_p10 }
  0xb1   : > { %p1381_p2 = pnand %p1380_p3, %p1374_p4 }
  0xb3   : > { %1384 = shalt.err (!%p1381_p2)
}
  0xb4   : > { %1118 = dma.hbm_to_vmem [thread:$0]  (!%p1745_p11), %s1739_s23, 128, %s1741_s14, %s289_s16  }
  0xb5   : > { %p2079_p0 = scmp.ne.s32.totalorder %s2070_s8, 0 }
  0xb6   : > { %s1777_s15 = sand.u32 (!%p2079_p0), 1, %s1455_s25  }
  0xb7   : > { %309 = sbr.rel (%p2079_p0) target bundleno = 963 (0x3c3), region = 48  ;;  %s1049_s28 = sshll.u32 (!%p2079_p0), %s1777_s15, 3 }
  0xb8   : > { %s312_s18 = scalar_lea.sflag (!%p2079_p0), [#allocation3], %s1777_s15  ;;  %s315_s9 = scalar_lea.vmem (!%p2079_p0), [#allocation2], %s1049_s28 }
  0xbe   : > { %1430 = dma.done.wait (%p1720_p6), %s312_s18, 128  }
  0xbf   : > { %1432 = vsyncadd (%p1720_p6), %s312_s18, 4294967168  ;;  %p2080_p10 = scmp.eq.s32.totalorder %s1543_s30, 0 }
  0xc1   : > { %1434 = dma.done.wait (%p2080_p10), [#allocation6], 96   ;;  %p2081_p4 = pmov %p2080_p10 }
  0xc3   : > { %1436 = vsyncadd (%p2081_p4), [#allocation6], 4294967200  ;;  %p2082_p11 = pmov %p2081_p4 }
  0xc4   : > { %p2083_p8 = pmov %p2081_p4 }
  0xc5   : > { %1438 = dma.done.wait (%p2082_p11), [#allocation9], 96  }
  0xc6   : > { %1440 = vsyncadd (%p2083_p8), [#allocation9], 4294967200  ;;  %p2084_p5 = pmov %p2081_p4 }
  0xc7   : > { %p2085_p7 = pmov %p2081_p4 }
  0xc8   : > { %1442 = dma.done.wait (%p2084_p5), [#allocation12], 128  }
  0xc9   : > { %1444 = vsyncadd (%p2085_p7), [#allocation12], 4294967168  ;;  %v1472_v0 = vmov 0   ;;  %v1799_v1 = vld [vmem:[%s315_s9] sm:$0xff]  ;;  %s1473_s8 = smov 15   ;;  %s1474_s12 = smov 16   ;;  %v374_v7 = vlaneseq }
  0xca   : > { %653 = vmatprep.mubr.bf16.mxu0 %v1472_v0  ;;  %1184 = vset.pattern.permute.xlu0 %v1472_v0  ;;  %v1803_v2 = vpack.c.bf16 %v1799_v1, %v1799_v1  ;;  %v1807_v3 = vcombine.high %v1799_v1, %v1799_v1  ;;  %s1475_s23 = smov 17   ;;  %s1476_s14 = smov 1   ;;  %v662_v5 = vld [vmem:[#allocation7] sm:$0xf]  ;;  %v670_v6 = vld [vmem:[#allocation8] sm:$0xf] }
  0xcb   : > { %1185 = vset.pattern.permute.xlu1 %v1472_v0  ;;  %860 = vmatprep.mubr.bf16.mxu1 %v1472_v0  ;;  %s1477_s21 = smov 127   ;;  %s1478_s16 = smov 113   ;;  %v375_v8 = vand.u32 127, %v374_v7  ;;  %v435_v16 = vshrl.u32 %v374_v7, 7  ;;  %vm412_vm6 = vcmask 138240   ;;  %vm496_vm7 = vcmask 7168  }
  0xcc   : > { %455 = vrot.lane.b32.xlu1 %v1803_v2, %s1473_s8  ;;  %446 = vrot.lane.b32.xlu0 %v1803_v2, %s1474_s12  ;;  %v1815_v4 = vpack.c.bf16 %v1807_v3, %v1807_v3  ;;  %s1479_s19 = smov 112   ;;  %s1480_s11 = smov 111   ;;  %vm459_vm8 = vcmask 121856   ;;  %vm450_vm9 = vcmask 130048   ;;  %vm575_vm13 = vcmask 1041408  }
  0xcd   : > { %v376_v9 = vadd.s32 128, %v375_v8  ;;  %v381_v10 = vand.u32 15, %v375_v8  ;;  %v440_v19 = vsub.s32 4, %v435_v16  ;;  %v436_v20 = vsub.s32 0, %v435_v16  ;;  %s1067_s22 = sshll.u32 %s1543_s30, 7  ;;  %s369_s29 = scalar_lea.vmem [#allocation14], %s1049_s28 }
  0xce   : > { %vm582_vm14 = vcmask 1043456   ;;  %s909_s18 = sshll.u32 %s369_s29, 4  ;;  %p2086_p9 = scmp.ne.s32.totalorder %s2076_s10, 0  ;;  %s2017_s18 = int_to_ptr.vmem [resolvable:$true] %s909_s18 }
  0xcf   : > { %v388_v11 = vand.u32 15, %v376_v9  ;;  %v420_v12 = vadd.s32 4294967295, %v381_v10  ;;  %v466_v14 = vadd.s32 1, %v381_v10  ;;  %s1481_s30 = smov [#allocation14]  }
  0xd0   : > { %408 = vrot.lane.b32.xlu0 %v1803_v2, %s1475_s23  ;;  %457 = vrot.lane.b32.xlu1 %v1815_v4, %s1473_s8  ;;  %s1389_s28 = sshll.u32 %s1481_s30, 4  ;;  %s1390_s28 = int_to_ptr.vmem [resolvable:$false] %s1389_s28 }
  0xd1   : > { %v421_v13 = vadd.s32 4294967295, %v388_v11  ;;  %v467_v15 = vadd.s32 1, %v388_v11  ;;  %vm422_vm0 = vcmp.ge.s32.totalorder %v420_v12, 0  ;;  %vm470_vm2 = vcmp.lt.s32.totalorder %v466_v14, 16  ;;  %p1392_p1 = scmp.lt.s32.totalorder %s2017_s18, %s1390_s28 }
  0xd3   : > { %vm423_vm1 = vcmp.ge.s32.totalorder %v421_v13, 0  ;;  %vm471_vm3 = vcmp.lt.s32.totalorder %v467_v15, 16 }
  0xd4   : > { %492 = vrot.lane.b32.xlu0 %v1803_v2, %s1476_s14  ;;  %410 = vrot.lane.b32.xlu1 %v1815_v4, %s1475_s23  ;;  %vm432_vm4 = vmpackc.low %vm423_vm1, %vm422_vm0  ;;  %vm509_vm0 = vcmask 1039360   ;;  %vm587_vm1 = vcmask 1045504  }
  0xd5   : > { %vm478_vm5 = vmpackc.low %vm471_vm3, %vm470_vm2  ;;  %v433_v21 = vsel %vm432_vm4, 65537, %v1472_v0  ;;  %vm522_vm2 = vcmask 924672   ;;  %vm535_vm3 = vcmask 916480   ;;  %vm544_vm4 = vcmask 908288  }
  0xd6   : > { %v479_v22 = vsel %vm478_vm5, 65537, %v1472_v0  ;;  %v1847_v26 = vrot.slane %v433_v21, %v436_v20  ;;  %v1853_v30 = vrot.slane %v433_v21, %v440_v19  ;;  %vm611_vm5 = vcmask 293888  }
  0xd7   : > { %v1845_v24 = vrot.slane %v479_v22, %v440_v19  ;;  %v1849_v27 = vrot.slane %v479_v22, %v436_v20 }
  0xd8   : > { %494 = vrot.lane.b32.xlu1 %v1815_v4, %s1476_s14  ;;  %448 = vrot.lane.b32.xlu0 %v1815_v4, %s1474_s12  ;;  %vm442_vm11 = vcmp.ne.s16.totalorder %v1847_v26, 0  ;;  %vm443_vm15 = vcmp.ne.s16.totalorder %v1853_v30, 0 }
  0xd9   : > { %vm489_vm10 = vcmp.ne.s16.totalorder %v1845_v24, 0  ;;  %vm488_vm12 = vcmp.ne.s16.totalorder %v1849_v27, 0 }
  0xdc   : > { %505 = vrot.lane.b32.xlu1 %v1803_v2, %s1477_s21  ;;  %507 = vrot.lane.b32.xlu0 %v1815_v4, %s1477_s21 }
  0xe0   : > { %518 = vrot.lane.b32.xlu1 %v1803_v2, %s1478_s16  ;;  %520 = vrot.lane.b32.xlu0 %v1815_v4, %s1478_s16 }
  0xe4   : > { %531 = vrot.lane.b32.xlu1 %v1803_v2, %s1479_s19  ;;  %533 = vrot.lane.b32.xlu0 %v1815_v4, %s1479_s19 }
  0xe8   : > { %542 = vrot.lane.b32.xlu1 %v1815_v4, %s1480_s11  ;;  %540 = vrot.lane.b32.xlu0 %v1803_v2, %s1480_s11 }
  0xec   : > { %665 = vperm.xlu0 %1184, %v662_v5   ;;  %673 = vperm.xlu1 %1185, %v670_v6  }
 0x13e   : > { %v456_v17 = vpop.permute.xlu1 %455  ;;  %v447_v18 = vpop.permute.xlu0 %446 }
 0x13f   : > { %v464_v34 = vsel %vm459_vm8, 0, %v456_v17  ;;  %v454_v35 = vsel %vm450_vm9, 0, %v447_v18 }
 0x140   : > { %v490_v42 = vsel %vm488_vm12, %v464_v34, 0  ;;  %v554_v43 = vrot.slane %v454_v35, 6 }
 0x141   : > { %v558_v53 = vrot.slane %v490_v42, 4 }
 0x142   : > { %v409_v23 = vpop.permute.xlu0 %408  ;;  %v458_v25 = vpop.permute.xlu1 %457 }
 0x143   : > { %v460_v28 = vsel %vm459_vm8, %v456_v17, %v458_v25  ;;  %v418_v32 = vsel %vm412_vm6, 0, %v409_v23 }
 0x144   : > { %v491_v36 = vsel %vm489_vm10, %v460_v28, 0  ;;  %v444_v37 = vsel %vm442_vm11, %v418_v32, 0 }
 0x145   : > { %v559_v46 = vrot.slane %v491_v36, 4  ;;  %v578_v52 = vsel %vm575_vm13, %v444_v37, %v554_v43  ;;  %v610_v36 = vld [vmem:[#allocation5] sm:$0x3] }
 0x146   : > { %v493_v29 = vpop.permute.xlu0 %492  ;;  %v411_v31 = vpop.permute.xlu1 %410  ;;  %v584_v61 = vsel %vm582_vm14, %v578_v52, %v558_v53  ;;  %v869_v52 = vld [vmem:[#allocation11] sm:$0xf] }
 0x147   : > { %v501_v33 = vsel %vm496_vm7, 0, %v493_v29  ;;  %v413_v39 = vsel %vm412_vm6, %v409_v23, %v411_v31 }
 0x148   : > { %v503_v38 = vsel %vm442_vm11, %v501_v33, 0  ;;  %v445_v50 = vsel %vm443_vm15, %v413_v39, 0 }
 0x149   : > { %v562_v49 = vrot.slane %v503_v38, 2 }
 0x14a   : > { %v495_v40 = vpop.permute.xlu1 %494  ;;  %v449_v41 = vpop.permute.xlu0 %448 }
 0x14b   : > { %v497_v44 = vsel %vm496_vm7, %v493_v29, %v495_v40  ;;  %v451_v45 = vsel %vm450_vm9, %v447_v18, %v449_v41  ;;  %v589_v0 = vsel %vm587_vm1, %v584_v61, %v562_v49 }
 0x14c   : > { %v504_v47 = vsel %vm443_vm15, %v497_v44, 0  ;;  %v555_v48 = vrot.slane %v451_v45, 6 }
 0x14d   : > { %v563_v51 = vrot.slane %v504_v47, 2 }
 0x14e   : > { %v506_v54 = vpop.permute.xlu1 %505  ;;  %v508_v55 = vpop.permute.xlu0 %507  ;;  %v581_v56 = vsel %vm575_vm13, %v445_v50, %v555_v48 }
 0x14f   : > { %v510_v57 = vsel %vm509_vm0, %v506_v54, %v508_v55  ;;  %v514_v58 = vsel %vm509_vm0, %v508_v55, 0  ;;  %v586_v59 = vsel %vm582_vm14, %v581_v56, %v559_v46 }
 0x150   : > { %v592_v60 = vsel %vm587_vm1, %v586_v59, %v563_v51  ;;  %v516_v62 = vsel %vm488_vm12, %v510_v57, 0  ;;  %v517_v63 = vsel %vm489_vm10, %v514_v58, 0  ;;  %v877_v51 = vld [vmem:[#allocation13] sm:$0xf] }
 0x151   : > { %621 = vmatprep.subr.bf16.mxu0 %v592_v60  ;;  %v566_v9 = vrot.slane %v516_v62, 6  ;;  %v567_v10 = vrot.slane %v517_v63, 6 }
 0x152   : > { %v519_v5 = vpop.permute.xlu1 %518  ;;  %622 = vmatpush1.bf16.msra.mxu0 %v589_v0  ;;  %v521_v6 = vpop.permute.xlu0 %520 }
 0x153   : > { %v523_v7 = vsel %vm522_vm2, %v519_v5, %v521_v6  ;;  %v527_v8 = vsel %vm522_vm2, %v521_v6, 0  ;;  %v599_v21 = vsel %vm575_vm13, %v1815_v4, %v567_v10  ;;  %v596_v22 = vsel %vm575_vm13, %v1803_v2, %v566_v9 }
 0x154   : > { %v529_v11 = vsel %vm442_vm11, %v523_v7, 0  ;;  %v530_v12 = vsel %vm443_vm15, %v527_v8, 0 }
 0x155   : > { %v570_v13 = vrot.slane %v529_v11, 4  ;;  %v571_v14 = vrot.slane %v530_v12, 4 }
 0x156   : > { %v532_v15 = vpop.permute.xlu1 %531  ;;  %v534_v16 = vpop.permute.xlu0 %533 }
 0x157   : > { %v536_v17 = vsel %vm535_vm3, %v532_v15, %v534_v16  ;;  %v539_v18 = vsel %vm535_vm3, %v534_v16, 0  ;;  %v603_v23 = vsel %vm582_vm14, %v599_v21, %v571_v14  ;;  %v601_v25 = vsel %vm582_vm14, %v596_v22, %v570_v13 }
 0x158   : > { %v573_v19 = vrot.slane %v536_v17, 2  ;;  %v574_v20 = vrot.slane %v539_v18, 2 }
 0x15a   : > { %v608_v28 = vsel %vm587_vm1, %v603_v23, %v574_v20  ;;  %v543_v29 = vpop.permute.xlu1 %542  ;;  %v605_v31 = vsel %vm587_vm1, %v601_v25, %v573_v19  ;;  %v541_v32 = vpop.permute.xlu0 %540 }
 0x15b   : > { %623 = vmatprep.subr.bf16.mxu0 %v608_v28  ;;  %v549_v33 = vsel %vm544_vm4, %v543_v29, 0  ;;  %v545_v34 = vsel %vm544_vm4, %v541_v32, %v543_v29 }
 0x15c   : > { %v552_v4 = vsel %vm489_vm10, %v549_v33, 0  ;;  %624 = vmatpush1.bf16.msra.mxu0 %v605_v31  ;;  %v551_v2 = vsel %vm488_vm12, %v545_v34, 0 }
 0x15d   : > { %1057 = vmatprep.subr.msk.bf16.mxu0 %vm575_vm13, %v552_v4  ;;  %v616_v35 = vsel %vm575_vm13, %v551_v2, 0 }
 0x160   : > { %626 = vmatpush1.bf16.msra.mxu0 %v616_v35 }
 0x163   : > { %1058 = vmatmul.mubr.msk.bf16.vlgmr.msra.gmra.mrb[0].mxu0 %vm611_vm5, %v610_v36 }
 0x16b   : > { %v666_v37 = vpop.permute.xlu0 %665  ;;  %v674_v39 = vpop.permute.xlu1 %673 }
 0x236   : > { %v655_v38 = vpop.f32.mrb[0].mxu0 }
 0x237   : > { %v668_v40 = vmul.f32 %v666_v37, %v655_v38  ;;  %v657_v41 = vpop.f32.mrb[1].mxu0 }
 0x238   : > { %v669_v42 = vmul.f32 %v666_v37, %v657_v41  ;;  %v659_v43 = vpop.f32.mrb[2].mxu0 }
 0x239   : > { %v676_v44 = vadd.f32 %v674_v39, %v668_v40  ;;  %v660_v45 = vpop.f32.mrb[3].mxu0 }
 0x23a   : > { %v677_v46 = vadd.f32 %v674_v39, %v669_v42 }
 0x23b   : > { %v678_v47 = vmax.f32 %v676_v44, 0.0 }
 0x23c   : > { %v679_v48 = vmax.f32 %v677_v46, 0.0 }
 0x23d   : > { %v1914_v49 = vpack.c.bf16 %v678_v47, %v678_v47 }
 0x23e   : > { %v1920_v50 = vpack.c.bf16 %v679_v48, %v679_v48 }
 0x23f   : > { %724 = vrot.lane.b32.xlu0 %v1914_v49, %s1477_s21  ;;  %695 = vrot.lane.b32.xlu1 %v1914_v49, %s1474_s12 }
 0x243   : > { %697 = vrot.lane.b32.xlu0 %v1920_v50, %s1474_s12  ;;  %702 = vrot.lane.b32.xlu1 %v1914_v49, %s1473_s8  ;;  %s2015_s12 = scalar_lea.hbm %s2066_s7, %s1067_s22 }
 0x247   : > { %704 = vrot.lane.b32.xlu0 %v1920_v50, %s1473_s8  ;;  %684 = vrot.lane.b32.xlu1 %v1914_v49, %s1475_s23 }
 0x24b   : > { %686 = vrot.lane.b32.xlu0 %v1920_v50, %s1475_s23  ;;  %713 = vrot.lane.b32.xlu1 %v1914_v49, %s1476_s14  ;;  %s895_s23 = scalar_lea.sflag [#allocation4], %s1777_s15 }
 0x24f   : > { %715 = vrot.lane.b32.xlu0 %v1920_v50, %s1476_s14  ;;  %726 = vrot.lane.b32.xlu1 %v1920_v50, %s1477_s21  ;;  %s1385_s14 = scalar_lea.vmem %s2017_s18, 128  ;;  %s1391_s21 = scalar_lea.vmem %s1390_s28, 256 }
 0x250   : > { %p1386_p6 = scmp.ne.s32.totalorder %s2017_s18, %s1385_s14  ;;  %p1393_p3 = scmp.lt.s32.totalorder %s1391_s21, %s1385_s14 }
 0x252   : > { %p1387_p12 = pnand %p1386_p6, %p2086_p9  ;;  %p1394_p2 = por %p1393_p3, %p1392_p1 }
 0x253   : > { %735 = vrot.lane.b32.xlu0 %v1914_v49, %s1478_s16  ;;  %737 = vrot.lane.b32.xlu1 %v1920_v50, %s1478_s16 }
 0x254   : > { %p1388_p13 = pneg %p1387_p12 }
 0x256   : > { %p1395_p0 = pnand %p1394_p2, %p1388_p13 }
 0x257   : > { %746 = vrot.lane.b32.xlu0 %v1914_v49, %s1479_s19  ;;  %748 = vrot.lane.b32.xlu1 %v1920_v50, %s1479_s19 }
 0x25b   : > { %755 = vrot.lane.b32.xlu0 %v1920_v50, %s1480_s11  ;;  %753 = vrot.lane.b32.xlu1 %v1914_v49, %s1480_s11 }
 0x25f   : > { %880 = vperm.xlu0 %1184, %v877_v51   ;;  %872 = vperm.xlu1 %1185, %v869_v52  }
 0x2b1   : > { %v725_v53 = vpop.permute.xlu0 %724  ;;  %v696_v54 = vpop.permute.xlu1 %695 }
 0x2b2   : > { %v701_v60 = vsel %vm450_vm9, 0, %v696_v54 }
 0x2b3   : > { %v765_v9 = vrot.slane %v701_v60, 6 }
 0x2b5   : > { %v698_v55 = vpop.permute.xlu0 %697  ;;  %v703_v56 = vpop.permute.xlu1 %702 }
 0x2b6   : > { %v699_v61 = vsel %vm450_vm9, %v696_v54, %v698_v55  ;;  %v709_v62 = vsel %vm459_vm8, 0, %v703_v56 }
 0x2b7   : > { %v766_v12 = vrot.slane %v699_v61, 6  ;;  %v711_v13 = vsel %vm488_vm12, %v709_v62, 0  ;;  %v818_v62 = vld [vmem:[#allocation10] sm:$0x3] }
 0x2b8   : > { %v769_v23 = vrot.slane %v711_v13, 4 }
 0x2b9   : > { %v705_v57 = vpop.permute.xlu0 %704  ;;  %v685_v58 = vpop.permute.xlu1 %684 }
 0x2ba   : > { %v691_v59 = vsel %vm412_vm6, 0, %v685_v58  ;;  %v706_v63 = vsel %vm459_vm8, %v703_v56, %v705_v57 }
 0x2bb   : > { %v693_v6 = vsel %vm442_vm11, %v691_v59, 0  ;;  %v712_v14 = vsel %vm489_vm10, %v706_v63, 0 }
 0x2bc   : > { %v788_v18 = vsel %vm575_vm13, %v693_v6, %v765_v9  ;;  %v770_v25 = vrot.slane %v712_v14, 4 }
 0x2bd   : > { %v687_v0 = vpop.permute.xlu0 %686  ;;  %v714_v5 = vpop.permute.xlu1 %713  ;;  %v793_v2 = vsel %vm582_vm14, %v788_v18, %v769_v23 }
 0x2be   : > { %v688_v7 = vsel %vm412_vm6, %v685_v58, %v687_v0  ;;  %v720_v8 = vsel %vm496_vm7, 0, %v714_v5 }
 0x2bf   : > { %v694_v10 = vsel %vm443_vm15, %v688_v7, 0  ;;  %v722_v11 = vsel %vm442_vm11, %v720_v8, 0 }
 0x2c0   : > { %v773_v15 = vrot.slane %v722_v11, 2  ;;  %v791_v22 = vsel %vm575_vm13, %v694_v10, %v766_v12 }
 0x2c1   : > { %v716_v16 = vpop.permute.xlu0 %715  ;;  %v727_v17 = vpop.permute.xlu1 %726  ;;  %v795_v4 = vsel %vm582_vm14, %v791_v22, %v770_v25 }
 0x2c2   : > { %v717_v19 = vsel %vm496_vm7, %v714_v5, %v716_v16  ;;  %v728_v20 = vsel %vm509_vm0, %v725_v53, %v727_v17  ;;  %v731_v21 = vsel %vm509_vm0, %v727_v17, 0  ;;  %v797_v38 = vsel %vm587_vm1, %v793_v2, %v773_v15 }
 0x2c3   : > { %v723_v28 = vsel %vm443_vm15, %v717_v19, 0  ;;  %v733_v31 = vsel %vm488_vm12, %v728_v20, 0  ;;  %v734_v32 = vsel %vm489_vm10, %v731_v21, 0 }
 0x2c4   : > { %v774_v29 = vrot.slane %v723_v28, 2  ;;  %v777_v39 = vrot.slane %v733_v31, 6  ;;  %v778_v40 = vrot.slane %v734_v32, 6 }
 0x2c5   : > { %v736_v33 = vpop.permute.xlu0 %735  ;;  %v738_v34 = vpop.permute.xlu1 %737 }
 0x2c6   : > { %v739_v35 = vsel %vm522_vm2, %v736_v33, %v738_v34  ;;  %v742_v36 = vsel %vm522_vm2, %v738_v34, 0  ;;  %v800_v37 = vsel %vm587_vm1, %v795_v4, %v774_v29  ;;  %v807_v53 = vsel %vm575_vm13, %v1920_v50, %v778_v40 }
 0x2c7   : > { %v744_v41 = vsel %vm442_vm11, %v739_v35, 0  ;;  %v745_v42 = vsel %vm443_vm15, %v742_v36, 0  ;;  %828 = vmatprep.subr.bf16.mxu1 %v800_v37  ;;  %v804_v26 = vsel %vm575_vm13, %v1914_v49, %v777_v39 }
 0x2c8   : > { %v781_v43 = vrot.slane %v744_v41, 4  ;;  %v782_v44 = vrot.slane %v745_v42, 4  ;;  %829 = vmatpush1.bf16.msra.mxu1 %v797_v38 }
 0x2c9   : > { %v747_v45 = vpop.permute.xlu0 %746  ;;  %v749_v46 = vpop.permute.xlu1 %748 }
 0x2ca   : > { %v750_v47 = vsel %vm535_vm3, %v747_v45, %v749_v46  ;;  %v752_v48 = vsel %vm535_vm3, %v749_v46, 0  ;;  %v811_v30 = vsel %vm582_vm14, %v807_v53, %v782_v44  ;;  %v809_v54 = vsel %vm582_vm14, %v804_v26, %v781_v43 }
 0x2cb   : > { %v784_v51 = vrot.slane %v750_v47, 2  ;;  %v785_v52 = vrot.slane %v752_v48, 2 }
 0x2cd   : > { %v756_v55 = vpop.permute.xlu0 %755  ;;  %v754_v56 = vpop.permute.xlu1 %753  ;;  %v816_v57 = vsel %vm587_vm1, %v811_v30, %v785_v52  ;;  %v813_v58 = vsel %vm587_vm1, %v809_v54, %v784_v51 }
 0x2ce   : > { %v760_v59 = vsel %vm544_vm4, %v756_v55, 0  ;;  %v757_v60 = vsel %vm544_vm4, %v754_v56, %v756_v55  ;;  %830 = vmatprep.subr.bf16.mxu1 %v816_v57 }
 0x2cf   : > { %v763_v50 = vsel %vm489_vm10, %v760_v59, 0  ;;  %831 = vmatpush1.bf16.msra.mxu1 %v813_v58  ;;  %v762_v49 = vsel %vm488_vm12, %v757_v60, 0 }
 0x2d0   : > { %1059 = vmatprep.subr.msk.bf16.mxu1 %vm575_vm13, %v763_v50  ;;  %v823_v61 = vsel %vm575_vm13, %v762_v49, 0 }
 0x2d3   : > { %833 = vmatpush1.bf16.msra.mxu1 %v823_v61 }
 0x2d6   : > { %1060 = vmatmul.mubr.msk.bf16.vlgmr.msra.gmra.mrb[0].mxu1 %vm611_vm5, %v818_v62 }
 0x2de   : > { %v873_v63 = vpop.permute.xlu1 %872  ;;  %v881_v24 = vpop.permute.xlu0 %880 }
 0x3a9   : > { %v862_v0 = vpop.f32.mrb[0].mxu1 }
 0x3aa   : > { %v875_v5 = vmul.f32 %v873_v63, %v862_v0  ;;  %v864_v6 = vpop.f32.mrb[1].mxu1 }
 0x3ab   : > { %v876_v7 = vmul.f32 %v873_v63, %v864_v6  ;;  %v866_v8 = vpop.f32.mrb[2].mxu1 }
 0x3ac   : > { %v883_v27 = vadd.f32 %v881_v24, %v875_v5  ;;  %v867_v9 = vpop.f32.mrb[3].mxu1 }
 0x3ad   : > { %v884_v10 = vadd.f32 %v881_v24, %v876_v7 }
 0x3ae   : > { %v885_v11 = vadd.f32 %v883_v27, %v1799_v1 }
 0x3af   : > { %v886_v12 = vadd.f32 %v884_v10, %v1807_v3 }
 0x3b0   : > { %v887_v13 = vmax.f32 %v885_v11, 0.0 }
 0x3b1   : > { %v888_v14 = vmax.f32 %v886_v12, 0.0 }
 0x3b3   : > { %v891_v15 = vcombine.low %v887_v13, %v888_v14 }
 0x3b5   : > { %893 = vst [vmem:[%s369_s29] sm:$0xff] %v891_v15 }
 0x3b6   : > { %1398 = shalt.err (!%p1395_p0)
}
 0x3b7   : > { %s1399_s15 = scalar_lea.hbm %s2015_s12, 128  ;;  %s1403_s11 = scalar_lea.hbm %s2066_s7, 256 }
 0x3b8   : > { %p1400_p10 = scmp.ne.s32.totalorder %s2015_s12, %s1399_s15  ;;  %p1404_p8 = scmp.lt.u32.totalorder %s2015_s12, %s2066_s7 }
 0x3b9   : > { %p1405_p5 = scmp.lt.u32.totalorder %s1403_s11, %s1399_s15  ;;  %p1407_p6 = scmp.lt.u32.totalorder %s1399_s15, %s2015_s12 }
 0x3ba   : > { %p1401_p4 = pnand %p1400_p10, %p2086_p9 }
 0x3bb   : > { %p1406_p7 = por %p1405_p5, %p1404_p8 }
 0x3bc   : > { %p1402_p11 = pneg %p1401_p4 }
 0x3bd   : > { %p1408_p12 = por %p1407_p6, %p1406_p7 }
 0x3bf   : > { %p1409_p13 = pnand %p1408_p12, %p1402_p11 }
 0x3c1   : > { %1412 = shalt.err (!%p1409_p13)
}
 0x3c2   : > { %1094 = dma.vmem_to_hbm [thread:$0]  (%p2086_p9), %s2017_s18, 128, %s2015_s12, %s895_s23  }
 0x3c3 PF: > { %s921_s9 = sand.u32 1, %s1451_s24   ;;  %p2087_p1 = scmp.ne.s32.totalorder %s2077_s20, 0 }
 0x3c4   : > { %p2088_p3 = scmp.ge.s32.totalorder %s1463_s27, 2  ;;  %s922_s8 = scalar_lea.sflag [#allocation4], %s921_s9 }
 0x3c6   : > { %p1120_p2 = pnand %p2088_p3, %p2087_p1 }
 0x3c8   : > { %1446 = dma.done.wait (!%p1120_p2), %s922_s8, 128  }
 0x3c9   : > { %1448 = vsyncadd (!%p1120_p2), %s922_s8, 4294967168  ;;  %p23_p0 = scmp.ge.s32.totalorder %s1701_s13, 4   ;;  %s2089_s24 = smov %s1455_s25 }
 0x3ca   : > { %s2090_s25 = smov %s1459_s26  ;;  %s2091_s26 = smov %s1712_s17 }
 0x3cb   : > { %s2092_s27 = smov %s1701_s13  ;;  %25 = sbr.rel (!%p23_p0) target bundleno = 8 (0x8), region = 117 }
 0x3d2   :  { %927 = vsyncpa [#allocation3], 1 }
 0x3d3   :  { %929 = vsyncpa [#allocation3 + $0x1], 1 }
 0x3d4   :  { %930 = vsyncpa [#allocation6], 1 }
 0x3d5   :  { %931 = vsyncpa [#allocation9], 1 }
 0x3d6   :  { %932 = vsyncpa [#allocation12], 1 }
 0x3d7   :  { %933 = vsyncpa [#allocation4], 1 }
 0x3d8   :  { %935 = vsyncpa [#allocation4 + $0x1], 1 }

</bundles_post_ra>
